<compile_context>
chip_gen: v6e
topology: v6e:2x2x1
jax: 0.10.0
libtpu: 0.0.40
codegen_flags: <defaults>
</compile_context>

<pallas_src>
import numpy as np
import jax
import jax.numpy as jnp
from jax import lax
from jax.experimental import pallas as pl
from jax.experimental.pallas import tpu as pltpu


def _round_up(x, m):
    return ((x + m - 1) // m) * m


def _vmem_limit_bytes():
    """Generation-aware scoped-VMEM limit."""
    try:
        kind = jax.devices()[0].device_kind.lower()
    except Exception:
        kind = ""
    if ("v4" in kind) or ("v5" in kind) or ("v6" in kind):
        return 96 * 1024 * 1024      # 128 MiB physical -> generous scoped limit
    return 48 * 1024 * 1024          # v7x: 64 MiB physical -> leave headroom


VMEM_LIMIT = _vmem_limit_bytes()


# ---------------------------------------------------------------------------
# Standalone RMSNorm kernel: y = x / sqrt(mean(x^2) + eps) * w, emitted bf16.
#   x: (M, K) f32 residual-stream activations, w: (K,)
# ---------------------------------------------------------------------------

def pallas_rmsnorm_bf16(x, w, *, eps=1e-5, tm=256):
    M, K = x.shape
    tm = min(tm, _round_up(M, 8))
    Mp = _round_up(M, tm)
    Kp = _round_up(K, 128)

    x_p = x
    if (Mp, Kp) != (M, K):
        x_p = jnp.pad(x_p, ((0, Mp - M), (0, Kp - K)))
    w_p = w.astype(jnp.float32).reshape(1, K)
    if Kp != K:
        w_p = jnp.pad(w_p, ((0, 0), (0, Kp - K)))

    inv_k = np.float32(1.0 / K)      # true K (zero padding does not bias the mean)
    eps = np.float32(eps)

    def kernel(x_ref, w_ref, o_ref):
        xf = x_ref[...].astype(jnp.float32)
        ms = jnp.sum(xf * xf, axis=-1, keepdims=True) * inv_k
        o_ref[...] = (xf * lax.rsqrt(ms + eps) * w_ref[...]).astype(o_ref.dtype)

    out = pl.pallas_call(
        kernel,
        grid=(Mp // tm,),
        in_specs=[pl.BlockSpec((tm, Kp), lambda i: (i, 0)),
                  pl.BlockSpec((1, Kp), lambda i: (0, 0))],
        out_specs=pl.BlockSpec((tm, Kp), lambda i: (i, 0)),
        out_shape=jax.ShapeDtypeStruct((Mp, Kp), jnp.bfloat16),
        compiler_params=pltpu.CompilerParams(
            dimension_semantics=("parallel",),
            vmem_limit_bytes=VMEM_LIMIT),
    )(x_p, w_p)

    if (Mp, Kp) != (M, K):
        out = out[:M, :K]
    return out


# ---------------------------------------------------------------------------
# Tiled matmul: out = [gelu]( x @ W ) [+ residual]
#   x: (M, K) (cast to bf16)   W: (K, N) pre-transposed, bf16   out: (M, N)
# ---------------------------------------------------------------------------

def pallas_matmul(x, w, *, residual=None, gelu=False, out_dtype=jnp.float32,
                  tm=512, tn=512, tk=1024):
    M, K = x.shape
    K2, N = w.shape
    assert K == K2
    has_res = residual is not None

    tm = min(tm, _round_up(M, 8))
    tn = min(tn, _round_up(N, 128))
    tk = min(tk, _round_up(K, 128))
    Mp, Np, Kp = _round_up(M, tm), _round_up(N, tn), _round_up(K, tk)
    nk = Kp // tk

    def pad2(a, r, c):
        pr, pc = r - a.shape[0], c - a.shape[1]
        return jnp.pad(a, ((0, pr), (0, pc))) if (pr or pc) else a

    x_p = pad2(x.astype(jnp.bfloat16), Mp, Kp)
    w_p = pad2(w.astype(jnp.bfloat16), Kp, Np)

    inputs = [x_p, w_p]
    in_specs = [pl.BlockSpec((tm, tk), lambda i, j, k: (i, k)),
                pl.BlockSpec((tk, tn), lambda i, j, k: (k, j))]
    if has_res:
        inputs.append(pad2(residual.astype(jnp.float32), Mp, Np))
        in_specs.append(pl.BlockSpec((tm, tn), lambda i, j, k: (i, j)))

    inv_sqrt2 = np.float32(1.0 / np.sqrt(2.0))

    def kernel(*refs):
        x_ref, w_ref = refs[0], refs[1]
        if has_res:
            res_ref, o_ref, acc_ref = refs[2], refs[3], refs[4]
        else:
            res_ref, o_ref, acc_ref = None, refs[2], refs[3]

        @pl.when(pl.program_id(2) == 0)
        def _init():
            acc_ref[...] = jnp.zeros_like(acc_ref)

        acc_ref[...] += jnp.dot(x_ref[...], w_ref[...],
                                preferred_element_type=jnp.float32)

        @pl.when(pl.program_id(2) == nk - 1)
        def _finalize():
            out = acc_ref[...]
            if gelu:
                out = 0.5 * out * (1.0 + lax.erf(out * inv_sqrt2))
            if has_res:
                out = out + res_ref[...]
            o_ref[...] = out.astype(o_ref.dtype)

    out = pl.pallas_call(
        kernel,
        grid=(Mp // tm, Np // tn, nk),
        in_specs=in_specs,
        out_specs=pl.BlockSpec((tm, tn), lambda i, j, k: (i, j)),
        out_shape=jax.ShapeDtypeStruct((Mp, Np), out_dtype),
        scratch_shapes=[pltpu.VMEM((tm, tn), jnp.float32)],
        compiler_params=pltpu.CompilerParams(
            dimension_semantics=("parallel", "parallel", "arbitrary"),
            vmem_limit_bytes=VMEM_LIMIT),
    )(*inputs)

    if (Mp, Np) != (M, N):
        out = out[:M, :N]
    return out


# ---------------------------------------------------------------------------
# Flash-style causal attention with online softmax.
# Scale 1/sqrt(d_k) is pre-folded into the Q projection weights.
# ---------------------------------------------------------------------------

def _flash_kernel_factory(tq, tkv, q_axis, kv_axis):
    neg_big = np.float32(-1e30)   # finite mask value: NaN-safe under tiling/padding

    def kernel(q_ref, k_ref, v_ref, o_ref, m_ref, l_ref, acc_ref):
        qi = pl.program_id(q_axis)
        ki = pl.program_id(kv_axis)

        @pl.when(ki == 0)
        def _init():
            m_ref[...] = jnp.full_like(m_ref, -jnp.inf)
            l_ref[...] = jnp.zeros_like(l_ref)
            acc_ref[...] = jnp.zeros_like(acc_ref)

        q_start = qi * tq
        q_last = q_start + (tq - 1)
        kv_start = ki * tkv
        kv_last = kv_start + (tkv - 1)

        def update(masked):
            s = jnp.einsum('hqd,hkd->hqk', q_ref[...], k_ref[...],
                           preferred_element_type=jnp.float32)
            if masked:
                row = q_start + lax.broadcasted_iota(jnp.int32, (1, tq, tkv), 1)
                col = kv_start + lax.broadcasted_iota(jnp.int32, (1, tq, tkv), 2)
                s = jnp.where(col > row, neg_big, s)
            m_prev = m_ref[...]
            m_new = jnp.maximum(m_prev, jnp.max(s, axis=-1, keepdims=True))
            alpha = jnp.exp(m_prev - m_new)
            p = jnp.exp(s - m_new)
            l_ref[...] = alpha * l_ref[...] + jnp.sum(p, axis=-1, keepdims=True)
            acc_ref[...] = alpha * acc_ref[...] + jnp.einsum(
                'hqk,hkd->hqd', p.astype(v_ref.dtype), v_ref[...],
                preferred_element_type=jnp.float32)
            m_ref[...] = m_new

        # Block strictly below the causal diagonal: fully visible, no mask.
        @pl.when(kv_last <= q_start)
        def _visible():
            update(masked=False)

        # Block straddling the diagonal: apply the causal mask.
        @pl.when(jnp.logical_and(kv_start <= q_last, kv_last > q_start))
        def _diag():
            update(masked=True)

        # Blocks with kv_start > q_last are fully masked and skipped entirely.

        @pl.when(ki == pl.num_programs(kv_axis) - 1)
        def _finalize():
            o_ref[...] = (acc_ref[...] *
                          pl.reciprocal(l_ref[...], approx=True)).astype(o_ref.dtype)

    return kernel


def flash_attention_fused_qkv(qkv, B, T, num_heads, d_k, *, t_tile=256):
    """qkv: (B, T, 3*H*d_k) bf16 (Q|K|V, head-major inside each).
       Returns (B, T, H*d_k) bf16 already in merged-head layout.
       Requires d_k % 128 == 0 (BlockSpec lane constraint)."""
    H = num_heads
    tq = min(t_tile, _round_up(T, 8))
    tkv = tq
    Tp = _round_up(T, tq)
    if Tp != T:
        qkv = jnp.pad(qkv, ((0, 0), (0, Tp - T), (0, 0)))

    kernel = _flash_kernel_factory(tq, tkv, q_axis=2, kv_axis=3)

    q_spec = pl.BlockSpec((1, tq, d_k), lambda b, h, i, j: (b, i, h))
    k_spec = pl.BlockSpec((1, tkv, d_k), lambda b, h, i, j: (b, j, H + h))
    v_spec = pl.BlockSpec((1, tkv, d_k), lambda b, h, i, j: (b, j, 2 * H + h))
    o_spec = pl.BlockSpec((1, tq, d_k), lambda b, h, i, j: (b, i, h))

    out = pl.pallas_call(
        kernel,
        grid=(B, H, Tp // tq, Tp // tkv),
        in_specs=[q_spec, k_spec, v_spec],
        out_specs=o_spec,
        out_shape=jax.ShapeDtypeStruct((B, Tp, H * d_k), jnp.bfloat16),
        scratch_shapes=[pltpu.VMEM((1, tq, 1), jnp.float32),
                        pltpu.VMEM((1, tq, 1), jnp.float32),
                        pltpu.VMEM((1, tq, d_k), jnp.float32)],
        compiler_params=pltpu.CompilerParams(
            dimension_semantics=("parallel", "parallel", "parallel", "arbitrary"),
            vmem_limit_bytes=VMEM_LIMIT),
    )(qkv, qkv, qkv)

    if Tp != T:
        out = out[:, :T, :]
    return out


def flash_attention_split(q, k, v, *, t_tile=256):
    """Fallback layout (d_k not a multiple of 128): q, k, v: (B*H, T, d_k) bf16."""
    BH, T, dk = q.shape
    tq = min(t_tile, _round_up(T, 8))
    tkv = tq
    Tp = _round_up(T, tq)

    def pad_t(a):
        return jnp.pad(a, ((0, 0), (0, Tp - T), (0, 0))) if Tp != T else a

    q, k, v = pad_t(q), pad_t(k), pad_t(v)
    kernel = _flash_kernel_factory(tq, tkv, q_axis=1, kv_axis=2)

    out = pl.pallas_call(
        kernel,
        grid=(BH, Tp // tq, Tp // tkv),
        in_specs=[pl.BlockSpec((1, tq, dk), lambda b, i, j: (b, i, 0)),
                  pl.BlockSpec((1, tkv, dk), lambda b, i, j: (b, j, 0)),
                  pl.BlockSpec((1, tkv, dk), lambda b, i, j: (b, j, 0))],
        out_specs=pl.BlockSpec((1, tq, dk), lambda b, i, j: (b, i, 0)),
        out_shape=jax.ShapeDtypeStruct((BH, Tp, dk), jnp.bfloat16),
        scratch_shapes=[pltpu.VMEM((1, tq, 1), jnp.float32),
                        pltpu.VMEM((1, tq, 1), jnp.float32),
                        pltpu.VMEM((1, tq, dk), jnp.float32)],
        compiler_params=pltpu.CompilerParams(
            dimension_semantics=("parallel", "parallel", "arbitrary"),
            vmem_limit_bytes=VMEM_LIMIT),
    )(q, k, v)

    if Tp != T:
        out = out[:, :T, :]
    return out


# ---------------------------------------------------------------------------
# Model glue (embedding gathers are plain XLA ops)
# ---------------------------------------------------------------------------

def init_params(key, vocab_size, context_length, num_layers, d_model,
                num_heads, d_ff):
    d_k = d_model // num_heads
    q_scale = np.float32(1.0 / np.sqrt(d_k))

    def nrm(k, shape, dtype=jnp.bfloat16):
        return (0.02 * jax.random.normal(k, shape, dtype=jnp.float32)).astype(dtype)

    keys = jax.random.split(key, 3 + 4 * num_layers)
    params = {
        "tok_emb": nrm(keys[0], (vocab_size, d_model), jnp.float32),
        "pos_emb": nrm(keys[1], (context_length, d_model), jnp.float32),
        # All Linear weights are stored pre-transposed to (in_features, out_features).
        "lm_head": nrm(keys[2], (d_model, vocab_size)),
        "ln_final": jnp.ones((d_model,), jnp.float32),
        "layers": [],
    }
    for l in range(num_layers):
        kq, ko, k1, k2 = keys[3 + 4 * l: 3 + 4 * (l + 1)]
        qkv = 0.02 * jax.random.normal(kq, (d_model, 3 * d_model), dtype=jnp.float32)
        # Fold the 1/sqrt(d_k) attention scale into the Q projection columns.
        qkv = qkv.at[:, :d_model].multiply(q_scale)
        params["layers"].append({
            "qkv": qkv.astype(jnp.bfloat16),          # (d, 3d): [W_q^T | W_k^T | W_v^T]
            "o":   nrm(ko, (d_model, d_model)),
            "w1":  nrm(k1, (d_model, d_ff)),
            "w2":  nrm(k2, (d_ff, d_model)),
            "ln1": jnp.ones((d_model,), jnp.float32),
            "ln2": jnp.ones((d_model,), jnp.float32),
        })
    return params


def transformer_lm_forward(params, token_ids, num_heads):
    B, T = token_ids.shape
    d_model = params["tok_emb"].shape[1]
    vocab_size = params["lm_head"].shape[1]
    d_k = d_model // num_heads

    # Embedding lookups (XLA gather glue); dropout(p=0) -> identity.
    tok = jnp.take(params["tok_emb"], token_ids, axis=0)          # (B, T, d)
    pos = params["pos_emb"][:T][None, :, :]                       # (1, T, d)
    h = (tok + pos).astype(jnp.float32).reshape(B * T, d_model)   # f32 residual stream

    use_fused_heads = (d_k % 128 == 0)   # BlockSpec lane constraint for head indexing

    for lp in params["layers"]:
        # Attention sublayer: h = h + W_o( attn( QKV( rmsnorm(h) ) ) )
        xn = pallas_rmsnorm_bf16(h, lp["ln1"])                    # (B*T, d) bf16
        qkv = pallas_matmul(xn, lp["qkv"], out_dtype=jnp.bfloat16)  # (B*T, 3d) bf16
        if use_fused_heads:
            o = flash_attention_fused_qkv(qkv.reshape(B, T, 3 * d_model),
                                          B, T, num_heads, d_k)
            o = o.reshape(B * T, d_model)                         # already merged heads
        else:
            # TODO(synk): d_k < 128 falls back to XLA head split/merge transposes;
            # the fused BlockSpec head-indexing path above avoids them when d_k%128==0.
            qkv4 = qkv.reshape(B, T, 3, num_heads, d_k).transpose(2, 0, 3, 1, 4)
            q = qkv4[0].reshape(B * num_heads, T, d_k)
            k = qkv4[1].reshape(B * num_heads, T, d_k)
            v = qkv4[2].reshape(B * num_heads, T, d_k)
            o = flash_attention_split(q, k, v)
            o = (o.reshape(B, num_heads, T, d_k)
                  .transpose(0, 2, 1, 3)
                  .reshape(B * T, d_model))
        h = pallas_matmul(o, lp["o"], residual=h, out_dtype=jnp.float32)

        # FFN sublayer: h = h + W2( gelu( W1( rmsnorm(h) ) ) )
        xn = pallas_rmsnorm_bf16(h, lp["ln2"])
        h1 = pallas_matmul(xn, lp["w1"], gelu=True, out_dtype=jnp.bfloat16)
        h = pallas_matmul(h1, lp["w2"], residual=h, out_dtype=jnp.float32)

    # Final RMSNorm, then lm_head (large tm to cut head-weight re-streaming).
    xn = pallas_rmsnorm_bf16(h, params["ln_final"])
    logits = pallas_matmul(xn, params["lm_head"], out_dtype=jnp.float32, tm=1024)
    return logits.reshape(B, T, vocab_size)


# ---------------------------------------------------------------------------
# Main
# ---------------------------------------------------------------------------

if __name__ == "__main__":
    vocab_size = 64
    context_length = 16
    num_layers = 2
    d_model = 32
    num_heads = 4
    d_ff = 64
    B, T = 2, 8

    key = jax.random.PRNGKey(0)
    kp, kx = jax.random.split(key)
    params = init_params(kp, vocab_size, context_length, num_layers,
                         d_model, num_heads, d_ff)
    token_ids = jax.random.randint(kx, (B, T), 0, vocab_size, dtype=jnp.int32)

    fwd = jax.jit(transformer_lm_forward, static_argnums=2)
    logits = fwd(params, token_ids, num_heads)
    logits = jax.block_until_ready(logits)
    assert logits.shape == (B, T, vocab_size)
    assert bool(jnp.all(jnp.isfinite(logits)))
    print("KERNEL_OK")
</pallas_src>

<mosaic_0001>
module attributes {stable_mosaic.version = 11 : i64} {
  func.func @kernel(%arg0: i32, %arg1: memref<16x128xf32, #tpu.memory_space<vmem>>, %arg2: memref<1x128xf32, #tpu.memory_space<vmem>>, %arg3: memref<16x128xbf16, #tpu.memory_space<vmem>>) attributes {dimension_semantics = [#tpu.dimension_semantics<parallel>], iteration_bounds = array<i64: 1>, scalar_prefetch = 0 : i64, scratch_operands = 0 : i64, tpu.core_type = #tpu.core_type<tc>, window_params = [{transform_indices = @transform_0, window_bounds = array<i64: 16, 128>}, {pipeline_mode = #tpu.pipeline_mode<synchronous>, transform_indices = @transform_1, window_bounds = array<i64: 1, 128>}, {transform_indices = @transform_2, window_bounds = array<i64: 16, 128>}]} {
    %c0 = arith.constant 0 : index
    %c0_0 = arith.constant 0 : index
    %0 = vector.load %arg1[%c0, %c0_0] : memref<16x128xf32, #tpu.memory_space<vmem>>, vector<16x128xf32>
    %1 = arith.mulf %0, %0 : vector<16x128xf32>
    %cst = arith.constant dense<0.000000e+00> : vector<16xf32>
    %2 = vector.multi_reduction <add>, %1, %cst [1] : vector<16x128xf32> to vector<16xf32>
    %3 = vector.shape_cast %2 : vector<16xf32> to vector<16x1xf32>
    %cst_1 = arith.constant 3.125000e-02 : f32
    %4 = vector.broadcast %cst_1 : f32 to vector<16x1xf32>
    %5 = arith.mulf %3, %4 : vector<16x1xf32>
    %cst_2 = arith.constant 9.99999974E-6 : f32
    %6 = vector.broadcast %cst_2 : f32 to vector<16x1xf32>
    %7 = arith.addf %5, %6 : vector<16x1xf32>
    %8 = math.rsqrt %7 : vector<16x1xf32>
    %9 = vector.broadcast %8 : vector<16x1xf32> to vector<16x128xf32>
    %10 = arith.mulf %0, %9 : vector<16x128xf32>
    %c0_3 = arith.constant 0 : index
    %c0_4 = arith.constant 0 : index
    %11 = vector.load %arg2[%c0_3, %c0_4] : memref<1x128xf32, #tpu.memory_space<vmem>>, vector<1x128xf32>
    %12 = vector.broadcast %11 : vector<1x128xf32> to vector<16x128xf32>
    %13 = arith.mulf %10, %12 : vector<16x128xf32>
    %14 = arith.truncf %13 : vector<16x128xf32> to vector<16x128xbf16>
    %c0_5 = arith.constant 0 : index
    %c0_6 = arith.constant 0 : index
    %15 = vector.load %arg3[%c0_5, %c0_6] : memref<16x128xbf16, #tpu.memory_space<vmem>>, vector<16x128xbf16>
    tpu.vector_store %arg3[%c0_5, %c0_6], %14 {strides = array<i32>} : memref<16x128xbf16, #tpu.memory_space<vmem>>, vector<16x128xbf16>,
    return
  }
  func.func @transform_0(%arg0: i32) -> (i32, i32) {
    %c0_i32 = arith.constant 0 : i32
    %c0_i32_0 = arith.constant 0 : i32
    return %arg0, %c0_i32 : i32, i32
  }
  func.func @transform_1(%arg0: i32) -> (i32, i32) {
    %c0_i32 = arith.constant 0 : i32
    %c0_i32_0 = arith.constant 0 : i32
    %c0_i32_1 = arith.constant 0 : i32
    return %c0_i32, %c0_i32_0 : i32, i32
  }
  func.func @transform_2(%arg0: i32) -> (i32, i32) {
    %c0_i32 = arith.constant 0 : i32
    %c0_i32_0 = arith.constant 0 : i32
    return %arg0, %c0_i32 : i32, i32
  }
}

module attributes {stable_mosaic.version = 11 : i64} {
  func.func @kernel(%arg0: i32, %arg1: i32, %arg2: i32, %arg3: memref<16x128xbf16, #tpu.memory_space<vmem>>, %arg4: memref<128x128xbf16, #tpu.memory_space<vmem>>, %arg5: memref<16x128xbf16, #tpu.memory_space<vmem>>, %arg6: memref<16x128xf32, #tpu.memory_space<vmem>>) attributes {dimension_semantics = [#tpu.dimension_semantics<parallel>, #tpu.dimension_semantics<parallel>, #tpu.dimension_semantics<arbitrary>], iteration_bounds = array<i64: 1, 1, 1>, scalar_prefetch = 0 : i64, scratch_operands = 1 : i64, tpu.core_type = #tpu.core_type<tc>, window_params = [{transform_indices = @transform_0, window_bounds = array<i64: 16, 128>}, {transform_indices = @transform_1, window_bounds = array<i64: 128, 128>}, {transform_indices = @transform_2, window_bounds = array<i64: 16, 128>}]} {
    %c0_i32 = arith.constant 0 : i32
    %0 = arith.cmpi eq, %arg2, %c0_i32 : i32
    %1 = arith.extui %0 : i1 to i32
    %c0_i32_0 = arith.constant 0 : i32
    %2 = arith.cmpi ne, %1, %c0_i32_0 : i32
    scf.if %2 {
      %cst_10 = arith.constant 0.000000e+00 : f32
      %12 = vector.broadcast %cst_10 : f32 to vector<16x128xf32>
      %c0_11 = arith.constant 0 : index
      %c0_12 = arith.constant 0 : index
      %13 = vector.load %arg6[%c0_11, %c0_12] : memref<16x128xf32, #tpu.memory_space<vmem>>, vector<16x128xf32>
      tpu.vector_store %arg6[%c0_11, %c0_12], %12 {strides = array<i32>} : memref<16x128xf32, #tpu.memory_space<vmem>>, vector<16x128xf32>,
    } else {
    }
    %c0 = arith.constant 0 : index
    %c0_1 = arith.constant 0 : index
    %3 = vector.load %arg6[%c0, %c0_1] : memref<16x128xf32, #tpu.memory_space<vmem>>, vector<16x128xf32>
    %c0_2 = arith.constant 0 : index
    %c0_3 = arith.constant 0 : index
    %4 = vector.load %arg3[%c0_2, %c0_3] : memref<16x128xbf16, #tpu.memory_space<vmem>>, vector<16x128xbf16>
    %c0_4 = arith.constant 0 : index
    %c0_5 = arith.constant 0 : index
    %5 = vector.load %arg4[%c0_4, %c0_5] : memref<128x128xbf16, #tpu.memory_space<vmem>>, vector<128x128xbf16>
    %cst = arith.constant dense<0.000000e+00> : vector<16x128xf32>
    %6 = tpu.matmul %4, %5, %cst {dimension_numbers = #tpu.dot_dimension_numbers<[1], [0], [0], [1], [0, 0, 1, 1], [], []>} : vector<16x128xbf16>, vector<128x128xbf16>, vector<16x128xf32> -> vector<16x128xf32>
    %7 = arith.addf %3, %6 : vector<16x128xf32>
    %c0_6 = arith.constant 0 : index
    %c0_7 = arith.constant 0 : index
    %8 = vector.load %arg6[%c0_6, %c0_7] : memref<16x128xf32, #tpu.memory_space<vmem>>, vector<16x128xf32>
    tpu.vector_store %arg6[%c0_6, %c0_7], %7 {strides = array<i32>} : memref<16x128xf32, #tpu.memory_space<vmem>>, vector<16x128xf32>,
    %c0_i32_8 = arith.constant 0 : i32
    %9 = arith.cmpi eq, %arg2, %c0_i32_8 : i32
    %10 = arith.extui %9 : i1 to i32
    %c0_i32_9 = arith.constant 0 : i32
    %11 = arith.cmpi ne, %10, %c0_i32_9 : i32
    scf.if %11 {
      %c0_10 = arith.constant 0 : index
      %c0_11 = arith.constant 0 : index
      %12 = vector.load %arg6[%c0_10, %c0_11] : memref<16x128xf32, #tpu.memory_space<vmem>>, vector<16x128xf32>
      %13 = arith.truncf %12 : vector<16x128xf32> to vector<16x128xbf16>
      %c0_12 = arith.constant 0 : index
      %c0_13 = arith.constant 0 : index
      %14 = vector.load %arg5[%c0_12, %c0_13] : memref<16x128xbf16, #tpu.memory_space<vmem>>, vector<16x128xbf16>
      tpu.vector_store %arg5[%c0_12, %c0_13], %13 {strides = array<i32>} : memref<16x128xbf16, #tpu.memory_space<vmem>>, vector<16x128xbf16>,
    } else {
    }
    return
  }
  func.func @transform_0(%arg0: i32, %arg1: i32, %arg2: i32) -> (i32, i32) {
    %c0_i32 = arith.constant 0 : i32
    return %arg0, %arg2 : i32, i32
  }
  func.func @transform_1(%arg0: i32, %arg1: i32, %arg2: i32) -> (i32, i32) {
    %c0_i32 = arith.constant 0 : i32
    return %arg2, %arg1 : i32, i32
  }
  func.func @transform_2(%arg0: i32, %arg1: i32, %arg2: i32) -> (i32, i32) {
    %c0_i32 = arith.constant 0 : i32
    return %arg0, %arg1 : i32, i32
  }
}

module attributes {stable_mosaic.version = 11 : i64} {
  func.func @kernel(%arg0: i32, %arg1: i32, %arg2: i32, %arg3: memref<1x8x8xbf16, #tpu.memory_space<vmem>>, %arg4: memref<1x8x8xbf16, #tpu.memory_space<vmem>>, %arg5: memref<1x8x8xbf16, #tpu.memory_space<vmem>>, %arg6: memref<1x8x8xbf16, #tpu.memory_space<vmem>>, %arg7: memref<1x8x1xf32, #tpu.memory_space<vmem>>, %arg8: memref<1x8x1xf32, #tpu.memory_space<vmem>>, %arg9: memref<1x8x8xf32, #tpu.memory_space<vmem>>) attributes {dimension_semantics = [#tpu.dimension_semantics<parallel>, #tpu.dimension_semantics<parallel>, #tpu.dimension_semantics<arbitrary>], iteration_bounds = array<i64: 8, 1, 1>, scalar_prefetch = 0 : i64, scratch_operands = 3 : i64, tpu.core_type = #tpu.core_type<tc>, window_params = [{transform_indices = @transform_0, window_bounds = array<i64: 1, 8, 8>}, {transform_indices = @transform_1, window_bounds = array<i64: 1, 8, 8>}, {transform_indices = @transform_2, window_bounds = array<i64: 1, 8, 8>}, {transform_indices = @transform_3, window_bounds = array<i64: 1, 8, 8>}]} {
    %c0_i32 = arith.constant 0 : i32
    %0 = arith.cmpi eq, %arg2, %c0_i32 : i32
    %1 = arith.extui %0 : i1 to i32
    %c0_i32_0 = arith.constant 0 : i32
    %2 = arith.cmpi ne, %1, %c0_i32_0 : i32
    scf.if %2 {
      %cst = arith.constant 0xFF800000 : f32
      %18 = vector.broadcast %cst : f32 to vector<1x8x1xf32>
      %c0 = arith.constant 0 : index
      %c0_7 = arith.constant 0 : index
      %c0_8 = arith.constant 0 : index
      %19 = vector.load %arg7[%c0, %c0_7, %c0_8] : memref<1x8x1xf32, #tpu.memory_space<vmem>>, vector<1x8x1xf32>
      tpu.vector_store %arg7[%c0, %c0_7, %c0_8], %18 {strides = array<i32>} : memref<1x8x1xf32, #tpu.memory_space<vmem>>, vector<1x8x1xf32>,
      %cst_9 = arith.constant 0.000000e+00 : f32
      %20 = vector.broadcast %cst_9 : f32 to vector<1x8x1xf32>
      %c0_10 = arith.constant 0 : index
      %c0_11 = arith.constant 0 : index
      %c0_12 = arith.constant 0 : index
      %21 = vector.load %arg8[%c0_10, %c0_11, %c0_12] : memref<1x8x1xf32, #tpu.memory_space<vmem>>, vector<1x8x1xf32>
      tpu.vector_store %arg8[%c0_10, %c0_11, %c0_12], %20 {strides = array<i32>} : memref<1x8x1xf32, #tpu.memory_space<vmem>>, vector<1x8x1xf32>,
      %cst_13 = arith.constant 0.000000e+00 : f32
      %22 = vector.broadcast %cst_13 : f32 to vector<1x8x8xf32>
      %c0_14 = arith.constant 0 : index
      %c0_15 = arith.constant 0 : index
      %c0_16 = arith.constant 0 : index
      %23 = vector.load %arg9[%c0_14, %c0_15, %c0_16] : memref<1x8x8xf32, #tpu.memory_space<vmem>>, vector<1x8x8xf32>
      tpu.vector_store %arg9[%c0_14, %c0_15, %c0_16], %22 {strides = array<i32>} : memref<1x8x8xf32, #tpu.memory_space<vmem>>, vector<1x8x8xf32>,
    } else {
    }
    %c8_i32 = arith.constant 8 : i32
    %3 = arith.muli %arg1, %c8_i32 : i32
    %c7_i32 = arith.constant 7 : i32
    %4 = arith.addi %3, %c7_i32 : i32
    %c8_i32_1 = arith.constant 8 : i32
    %5 = arith.muli %arg2, %c8_i32_1 : i32
    %c7_i32_2 = arith.constant 7 : i32
    %6 = arith.addi %5, %c7_i32_2 : i32
    %7 = arith.cmpi sle, %6, %3 : i32
    %8 = arith.extui %7 : i1 to i32
    %c0_i32_3 = arith.constant 0 : i32
    %9 = arith.cmpi ne, %8, %c0_i32_3 : i32
    scf.if %9 {
      %c0 = arith.constant 0 : index
      %c0_7 = arith.constant 0 : index
      %c0_8 = arith.constant 0 : index
      %18 = vector.load %arg3[%c0, %c0_7, %c0_8] : memref<1x8x8xbf16, #tpu.memory_space<vmem>>, vector<1x8x8xbf16>
      %c0_9 = arith.constant 0 : index
      %c0_10 = arith.constant 0 : index
      %c0_11 = arith.constant 0 : index
      %19 = vector.load %arg4[%c0_9, %c0_10, %c0_11] : memref<1x8x8xbf16, #tpu.memory_space<vmem>>, vector<1x8x8xbf16>
      "tpu.trace_start"() <{level = 10 : i32, message = "hqd,hkd->hqk"}> : () -> ()
      %cst = arith.constant dense<0.000000e+00> : vector<1x8x8xf32>
      %20 = tpu.matmul %18, %19, %cst {dimension_numbers = #tpu.dot_dimension_numbers<[2], [2], [1], [1], [0, 0, 0, 1, 1, 1], [0], [0]>} : vector<1x8x8xbf16>, vector<1x8x8xbf16>, vector<1x8x8xf32> -> vector<1x8x8xf32>
      "tpu.trace_stop"() : () -> ()
      %c0_12 = arith.constant 0 : index
      %c0_13 = arith.constant 0 : index
      %c0_14 = arith.constant 0 : index
      %21 = vector.load %arg7[%c0_12, %c0_13, %c0_14] : memref<1x8x1xf32, #tpu.memory_space<vmem>>, vector<1x8x1xf32>
      %cst_15 = arith.constant dense<0xFF800000> : vector<1x8xf32>
      %22 = vector.multi_reduction <maximumf>, %20, %cst_15 [2] : vector<1x8x8xf32> to vector<1x8xf32>
      %23 = vector.shape_cast %22 : vector<1x8xf32> to vector<1x8x1xf32>
      %24 = arith.maximumf %21, %23 : vector<1x8x1xf32>
      %25 = arith.subf %21, %24 : vector<1x8x1xf32>
      %26 = math.exp %25 : vector<1x8x1xf32>
      %27 = vector.broadcast %24 : vector<1x8x1xf32> to vector<1x8x8xf32>
      %28 = arith.subf %20, %27 : vector<1x8x8xf32>
      %29 = math.exp %28 : vector<1x8x8xf32>
      %c0_16 = arith.constant 0 : index
      %c0_17 = arith.constant 0 : index
      %c0_18 = arith.constant 0 : index
      %30 = vector.load %arg8[%c0_16, %c0_17, %c0_18] : memref<1x8x1xf32, #tpu.memory_space<vmem>>, vector<1x8x1xf32>
      %31 = arith.mulf %26, %30 : vector<1x8x1xf32>
      %cst_19 = arith.constant dense<0.000000e+00> : vector<1x8xf32>
      %32 = vector.multi_reduction <add>, %29, %cst_19 [2] : vector<1x8x8xf32> to vector<1x8xf32>
      %33 = vector.shape_cast %32 : vector<1x8xf32> to vector<1x8x1xf32>
      %34 = arith.addf %31, %33 : vector<1x8x1xf32>
      %c0_20 = arith.constant 0 : index
      %c0_21 = arith.constant 0 : index
      %c0_22 = arith.constant 0 : index
      %35 = vector.load %arg8[%c0_20, %c0_21, %c0_22] : memref<1x8x1xf32, #tpu.memory_space<vmem>>, vector<1x8x1xf32>
      tpu.vector_store %arg8[%c0_20, %c0_21, %c0_22], %34 {strides = array<i32>} : memref<1x8x1xf32, #tpu.memory_space<vmem>>, vector<1x8x1xf32>,
      %c0_23 = arith.constant 0 : index
      %c0_24 = arith.constant 0 : index
      %c0_25 = arith.constant 0 : index
      %36 = vector.load %arg9[%c0_23, %c0_24, %c0_25] : memref<1x8x8xf32, #tpu.memory_space<vmem>>, vector<1x8x8xf32>
      %37 = vector.broadcast %26 : vector<1x8x1xf32> to vector<1x8x8xf32>
      %38 = arith.mulf %37, %36 : vector<1x8x8xf32>
      %39 = arith.truncf %29 : vector<1x8x8xf32> to vector<1x8x8xbf16>
      %c0_26 = arith.constant 0 : index
      %c0_27 = arith.constant 0 : index
      %c0_28 = arith.constant 0 : index
      %40 = vector.load %arg5[%c0_26, %c0_27, %c0_28] : memref<1x8x8xbf16, #tpu.memory_space<vmem>>, vector<1x8x8xbf16>
      "tpu.trace_start"() <{level = 10 : i32, message = "hqk,hkd->hqd"}> : () -> ()
      %cst_29 = arith.constant dense<0.000000e+00> : vector<1x8x8xf32>
      %41 = tpu.matmul %39, %40, %cst_29 {dimension_numbers = #tpu.dot_dimension_numbers<[2], [1], [1], [2], [0, 0, 0, 1, 1, 2], [0], [0]>} : vector<1x8x8xbf16>, vector<1x8x8xbf16>, vector<1x8x8xf32> -> vector<1x8x8xf32>
      "tpu.trace_stop"() : () -> ()
      %42 = arith.addf %38, %41 : vector<1x8x8xf32>
      %c0_30 = arith.constant 0 : index
      %c0_31 = arith.constant 0 : index
      %c0_32 = arith.constant 0 : index
      %43 = vector.load %arg9[%c0_30, %c0_31, %c0_32] : memref<1x8x8xf32, #tpu.memory_space<vmem>>, vector<1x8x8xf32>
      tpu.vector_store %arg9[%c0_30, %c0_31, %c0_32], %42 {strides = array<i32>} : memref<1x8x8xf32, #tpu.memory_space<vmem>>, vector<1x8x8xf32>,
      %c0_33 = arith.constant 0 : index
      %c0_34 = arith.constant 0 : index
      %c0_35 = arith.constant 0 : index
      %44 = vector.load %arg7[%c0_33, %c0_34, %c0_35] : memref<1x8x1xf32, #tpu.memory_space<vmem>>, vector<1x8x1xf32>
      tpu.vector_store %arg7[%c0_33, %c0_34, %c0_35], %24 {strides = array<i32>} : memref<1x8x1xf32, #tpu.memory_space<vmem>>, vector<1x8x1xf32>,
    } else {
    }
    %10 = arith.cmpi sle, %5, %4 : i32
    %11 = arith.cmpi sgt, %6, %3 : i32
    %12 = arith.andi %10, %11 : i1
    %13 = arith.extui %12 : i1 to i32
    %c0_i32_4 = arith.constant 0 : i32
    %14 = arith.cmpi ne, %13, %c0_i32_4 : i32
    scf.if %14 {
      %c0 = arith.constant 0 : index
      %c0_7 = arith.constant 0 : index
      %c0_8 = arith.constant 0 : index
      %18 = vector.load %arg3[%c0, %c0_7, %c0_8] : memref<1x8x8xbf16, #tpu.memory_space<vmem>>, vector<1x8x8xbf16>
      %c0_9 = arith.constant 0 : index
      %c0_10 = arith.constant 0 : index
      %c0_11 = arith.constant 0 : index
      %19 = vector.load %arg4[%c0_9, %c0_10, %c0_11] : memref<1x8x8xbf16, #tpu.memory_space<vmem>>, vector<1x8x8xbf16>
      "tpu.trace_start"() <{level = 10 : i32, message = "hqd,hkd->hqk"}> : () -> ()
      %cst = arith.constant dense<0.000000e+00> : vector<1x8x8xf32>
      %20 = tpu.matmul %18, %19, %cst {dimension_numbers = #tpu.dot_dimension_numbers<[2], [2], [1], [1], [0, 0, 0, 1, 1, 1], [0], [0]>} : vector<1x8x8xbf16>, vector<1x8x8xbf16>, vector<1x8x8xf32> -> vector<1x8x8xf32>
      "tpu.trace_stop"() : () -> ()
      %21 = tpu.iota {dimensions = array<i32: 1>} : vector<1x8x8xi32>
      %22 = vector.broadcast %3 : i32 to vector<1x8x8xi32>
      %23 = arith.addi %22, %21 : vector<1x8x8xi32>
      %24 = tpu.iota {dimensions = array<i32: 2>} : vector<1x8x8xi32>
      %25 = vector.broadcast %5 : i32 to vector<1x8x8xi32>
      %26 = arith.addi %25, %24 : vector<1x8x8xi32>
      %27 = arith.cmpi sgt, %26, %23 : vector<1x8x8xi32>
      %cst_12 = arith.constant -1.000000e+30 : f32
      %28 = vector.broadcast %cst_12 : f32 to vector<1x8x8xf32>
      %29 = arith.select %27, %28, %20 : vector<1x8x8xi1>, vector<1x8x8xf32>
      %c0_13 = arith.constant 0 : index
      %c0_14 = arith.constant 0 : index
      %c0_15 = arith.constant 0 : index
      %30 = vector.load %arg7[%c0_13, %c0_14, %c0_15] : memref<1x8x1xf32, #tpu.memory_space<vmem>>, vector<1x8x1xf32>
      %cst_16 = arith.constant dense<0xFF800000> : vector<1x8xf32>
      %31 = vector.multi_reduction <maximumf>, %29, %cst_16 [2] : vector<1x8x8xf32> to vector<1x8xf32>
      %32 = vector.shape_cast %31 : vector<1x8xf32> to vector<1x8x1xf32>
      %33 = arith.maximumf %30, %32 : vector<1x8x1xf32>
      %34 = arith.subf %30, %33 : vector<1x8x1xf32>
      %35 = math.exp %34 : vector<1x8x1xf32>
      %36 = vector.broadcast %33 : vector<1x8x1xf32> to vector<1x8x8xf32>
      %37 = arith.subf %29, %36 : vector<1x8x8xf32>
      %38 = math.exp %37 : vector<1x8x8xf32>
      %c0_17 = arith.constant 0 : index
      %c0_18 = arith.constant 0 : index
      %c0_19 = arith.constant 0 : index
      %39 = vector.load %arg8[%c0_17, %c0_18, %c0_19] : memref<1x8x1xf32, #tpu.memory_space<vmem>>, vector<1x8x1xf32>
      %40 = arith.mulf %35, %39 : vector<1x8x1xf32>
      %cst_20 = arith.constant dense<0.000000e+00> : vector<1x8xf32>
      %41 = vector.multi_reduction <add>, %38, %cst_20 [2] : vector<1x8x8xf32> to vector<1x8xf32>
      %42 = vector.shape_cast %41 : vector<1x8xf32> to vector<1x8x1xf32>
      %43 = arith.addf %40, %42 : vector<1x8x1xf32>
      %c0_21 = arith.constant 0 : index
      %c0_22 = arith.constant 0 : index
      %c0_23 = arith.constant 0 : index
      %44 = vector.load %arg8[%c0_21, %c0_22, %c0_23] : memref<1x8x1xf32, #tpu.memory_space<vmem>>, vector<1x8x1xf32>
      tpu.vector_store %arg8[%c0_21, %c0_22, %c0_23], %43 {strides = array<i32>} : memref<1x8x1xf32, #tpu.memory_space<vmem>>, vector<1x8x1xf32>,
      %c0_24 = arith.constant 0 : index
      %c0_25 = arith.constant 0 : index
      %c0_26 = arith.constant 0 : index
      %45 = vector.load %arg9[%c0_24, %c0_25, %c0_26] : memref<1x8x8xf32, #tpu.memory_space<vmem>>, vector<1x8x8xf32>
      %46 = vector.broadcast %35 : vector<1x8x1xf32> to vector<1x8x8xf32>
      %47 = arith.mulf %46, %45 : vector<1x8x8xf32>
      %48 = arith.truncf %38 : vector<1x8x8xf32> to vector<1x8x8xbf16>
      %c0_27 = arith.constant 0 : index
      %c0_28 = arith.constant 0 : index
      %c0_29 = arith.constant 0 : index
      %49 = vector.load %arg5[%c0_27, %c0_28, %c0_29] : memref<1x8x8xbf16, #tpu.memory_space<vmem>>, vector<1x8x8xbf16>
      "tpu.trace_start"() <{level = 10 : i32, message = "hqk,hkd->hqd"}> : () -> ()
      %cst_30 = arith.constant dense<0.000000e+00> : vector<1x8x8xf32>
      %50 = tpu.matmul %48, %49, %cst_30 {dimension_numbers = #tpu.dot_dimension_numbers<[2], [1], [1], [2], [0, 0, 0, 1, 1, 2], [0], [0]>} : vector<1x8x8xbf16>, vector<1x8x8xbf16>, vector<1x8x8xf32> -> vector<1x8x8xf32>
      "tpu.trace_stop"() : () -> ()
      %51 = arith.addf %47, %50 : vector<1x8x8xf32>
      %c0_31 = arith.constant 0 : index
      %c0_32 = arith.constant 0 : index
      %c0_33 = arith.constant 0 : index
      %52 = vector.load %arg9[%c0_31, %c0_32, %c0_33] : memref<1x8x8xf32, #tpu.memory_space<vmem>>, vector<1x8x8xf32>
      tpu.vector_store %arg9[%c0_31, %c0_32, %c0_33], %51 {strides = array<i32>} : memref<1x8x8xf32, #tpu.memory_space<vmem>>, vector<1x8x8xf32>,
      %c0_34 = arith.constant 0 : index
      %c0_35 = arith.constant 0 : index
      %c0_36 = arith.constant 0 : index
      %53 = vector.load %arg7[%c0_34, %c0_35, %c0_36] : memref<1x8x1xf32, #tpu.memory_space<vmem>>, vector<1x8x1xf32>
      tpu.vector_store %arg7[%c0_34, %c0_35, %c0_36], %33 {strides = array<i32>} : memref<1x8x1xf32, #tpu.memory_space<vmem>>, vector<1x8x1xf32>,
    } else {
    }
    %c0_i32_5 = arith.constant 0 : i32
    %15 = arith.cmpi eq, %arg2, %c0_i32_5 : i32
    %16 = arith.extui %15 : i1 to i32
    %c0_i32_6 = arith.constant 0 : i32
    %17 = arith.cmpi ne, %16, %c0_i32_6 : i32
    scf.if %17 {
      %c0 = arith.constant 0 : index
      %c0_7 = arith.constant 0 : index
      %c0_8 = arith.constant 0 : index
      %18 = vector.load %arg9[%c0, %c0_7, %c0_8] : memref<1x8x8xf32, #tpu.memory_space<vmem>>, vector<1x8x8xf32>
      %c0_9 = arith.constant 0 : index
      %c0_10 = arith.constant 0 : index
      %c0_11 = arith.constant 0 : index
      %19 = vector.load %arg8[%c0_9, %c0_10, %c0_11] : memref<1x8x1xf32, #tpu.memory_space<vmem>>, vector<1x8x1xf32>
      %20 = tpu.reciprocal %19 {approx = true} : vector<1x8x1xf32> -> vector<1x8x1xf32>
      %21 = vector.broadcast %20 : vector<1x8x1xf32> to vector<1x8x8xf32>
      %22 = arith.mulf %18, %21 : vector<1x8x8xf32>
      %23 = arith.truncf %22 : vector<1x8x8xf32> to vector<1x8x8xbf16>
      %c0_12 = arith.constant 0 : index
      %c0_13 = arith.constant 0 : index
      %c0_14 = arith.constant 0 : index
      %24 = vector.load %arg6[%c0_12, %c0_13, %c0_14] : memref<1x8x8xbf16, #tpu.memory_space<vmem>>, vector<1x8x8xbf16>
      tpu.vector_store %arg6[%c0_12, %c0_13, %c0_14], %23 {strides = array<i32>} : memref<1x8x8xbf16, #tpu.memory_space<vmem>>, vector<1x8x8xbf16>,
    } else {
    }
    return
  }
  func.func @transform_0(%arg0: i32, %arg1: i32, %arg2: i32) -> (i32, i32, i32) {
    %c0_i32 = arith.constant 0 : i32
    %c0_i32_0 = arith.constant 0 : i32
    return %arg0, %arg1, %c0_i32 : i32, i32, i32
  }
  func.func @transform_1(%arg0: i32, %arg1: i32, %arg2: i32) -> (i32, i32, i32) {
    %c0_i32 = arith.constant 0 : i32
    %c0_i32_0 = arith.constant 0 : i32
    return %arg0, %arg2, %c0_i32 : i32, i32, i32
  }
  func.func @transform_2(%arg0: i32, %arg1: i32, %arg2: i32) -> (i32, i32, i32) {
    %c0_i32 = arith.constant 0 : i32
    %c0_i32_0 = arith.constant 0 : i32
    return %arg0, %arg2, %c0_i32 : i32, i32, i32
  }
  func.func @transform_3(%arg0: i32, %arg1: i32, %arg2: i32) -> (i32, i32, i32) {
    %c0_i32 = arith.constant 0 : i32
    %c0_i32_0 = arith.constant 0 : i32
    return %arg0, %arg1, %c0_i32 : i32, i32, i32
  }
}

module attributes {stable_mosaic.version = 11 : i64} {
  func.func @kernel(%arg0: i32, %arg1: i32, %arg2: i32, %arg3: memref<16x128xbf16, #tpu.memory_space<vmem>>, %arg4: memref<128x128xbf16, #tpu.memory_space<vmem>>, %arg5: memref<16x128xbf16, #tpu.memory_space<vmem>>, %arg6: memref<16x128xf32, #tpu.memory_space<vmem>>) attributes {dimension_semantics = [#tpu.dimension_semantics<parallel>, #tpu.dimension_semantics<parallel>, #tpu.dimension_semantics<arbitrary>], iteration_bounds = array<i64: 1, 1, 1>, scalar_prefetch = 0 : i64, scratch_operands = 1 : i64, tpu.core_type = #tpu.core_type<tc>, window_params = [{transform_indices = @transform_0, window_bounds = array<i64: 16, 128>}, {transform_indices = @transform_1, window_bounds = array<i64: 128, 128>}, {transform_indices = @transform_2, window_bounds = array<i64: 16, 128>}]} {
    %c0_i32 = arith.constant 0 : i32
    %0 = arith.cmpi eq, %arg2, %c0_i32 : i32
    %1 = arith.extui %0 : i1 to i32
    %c0_i32_0 = arith.constant 0 : i32
    %2 = arith.cmpi ne, %1, %c0_i32_0 : i32
    scf.if %2 {
      %cst_10 = arith.constant 0.000000e+00 : f32
      %12 = vector.broadcast %cst_10 : f32 to vector<16x128xf32>
      %c0_11 = arith.constant 0 : index
      %c0_12 = arith.constant 0 : index
      %13 = vector.load %arg6[%c0_11, %c0_12] : memref<16x128xf32, #tpu.memory_space<vmem>>, vector<16x128xf32>
      tpu.vector_store %arg6[%c0_11, %c0_12], %12 {strides = array<i32>} : memref<16x128xf32, #tpu.memory_space<vmem>>, vector<16x128xf32>,
    } else {
    }
    %c0 = arith.constant 0 : index
    %c0_1 = arith.constant 0 : index
    %3 = vector.load %arg6[%c0, %c0_1] : memref<16x128xf32, #tpu.memory_space<vmem>>, vector<16x128xf32>
    %c0_2 = arith.constant 0 : index
    %c0_3 = arith.constant 0 : index
    %4 = vector.load %arg3[%c0_2, %c0_3] : memref<16x128xbf16, #tpu.memory_space<vmem>>, vector<16x128xbf16>
    %c0_4 = arith.constant 0 : index
    %c0_5 = arith.constant 0 : index
    %5 = vector.load %arg4[%c0_4, %c0_5] : memref<128x128xbf16, #tpu.memory_space<vmem>>, vector<128x128xbf16>
    %cst = arith.constant dense<0.000000e+00> : vector<16x128xf32>
    %6 = tpu.matmul %4, %5, %cst {dimension_numbers = #tpu.dot_dimension_numbers<[1], [0], [0], [1], [0, 0, 1, 1], [], []>} : vector<16x128xbf16>, vector<128x128xbf16>, vector<16x128xf32> -> vector<16x128xf32>
    %7 = arith.addf %3, %6 : vector<16x128xf32>
    %c0_6 = arith.constant 0 : index
    %c0_7 = arith.constant 0 : index
    %8 = vector.load %arg6[%c0_6, %c0_7] : memref<16x128xf32, #tpu.memory_space<vmem>>, vector<16x128xf32>
    tpu.vector_store %arg6[%c0_6, %c0_7], %7 {strides = array<i32>} : memref<16x128xf32, #tpu.memory_space<vmem>>, vector<16x128xf32>,
    %c0_i32_8 = arith.constant 0 : i32
    %9 = arith.cmpi eq, %arg2, %c0_i32_8 : i32
    %10 = arith.extui %9 : i1 to i32
    %c0_i32_9 = arith.constant 0 : i32
    %11 = arith.cmpi ne, %10, %c0_i32_9 : i32
    scf.if %11 {
      %c0_10 = arith.constant 0 : index
      %c0_11 = arith.constant 0 : index
      %12 = vector.load %arg6[%c0_10, %c0_11] : memref<16x128xf32, #tpu.memory_space<vmem>>, vector<16x128xf32>
      %cst_12 = arith.constant 5.000000e-01 : f32
      %13 = vector.broadcast %cst_12 : f32 to vector<16x128xf32>
      %14 = arith.mulf %13, %12 : vector<16x128xf32>
      %cst_13 = arith.constant 0.707106769 : f32
      %15 = vector.broadcast %cst_13 : f32 to vector<16x128xf32>
      %16 = arith.mulf %12, %15 : vector<16x128xf32>
      %17 = math.erf %16 : vector<16x128xf32>
      %cst_14 = arith.constant 1.000000e+00 : f32
      %18 = vector.broadcast %cst_14 : f32 to vector<16x128xf32>
      %19 = arith.addf %18, %17 : vector<16x128xf32>
      %20 = arith.mulf %14, %19 : vector<16x128xf32>
      %21 = arith.truncf %20 : vector<16x128xf32> to vector<16x128xbf16>
      %c0_15 = arith.constant 0 : index
      %c0_16 = arith.constant 0 : index
      %22 = vector.load %arg5[%c0_15, %c0_16] : memref<16x128xbf16, #tpu.memory_space<vmem>>, vector<16x128xbf16>
      tpu.vector_store %arg5[%c0_15, %c0_16], %21 {strides = array<i32>} : memref<16x128xbf16, #tpu.memory_space<vmem>>, vector<16x128xbf16>,
    } else {
    }
    return
  }
  func.func @transform_0(%arg0: i32, %arg1: i32, %arg2: i32) -> (i32, i32) {
    %c0_i32 = arith.constant 0 : i32
    return %arg0, %arg2 : i32, i32
  }
  func.func @transform_1(%arg0: i32, %arg1: i32, %arg2: i32) -> (i32, i32) {
    %c0_i32 = arith.constant 0 : i32
    return %arg2, %arg1 : i32, i32
  }
  func.func @transform_2(%arg0: i32, %arg1: i32, %arg2: i32) -> (i32, i32) {
    %c0_i32 = arith.constant 0 : i32
    return %arg0, %arg1 : i32, i32
  }
}

module attributes {stable_mosaic.version = 11 : i64} {
  func.func @kernel(%arg0: i32, %arg1: i32, %arg2: i32, %arg3: memref<16x128xbf16, #tpu.memory_space<vmem>>, %arg4: memref<128x128xbf16, #tpu.memory_space<vmem>>, %arg5: memref<16x128xf32, #tpu.memory_space<vmem>>, %arg6: memref<16x128xf32, #tpu.memory_space<vmem>>, %arg7: memref<16x128xf32, #tpu.memory_space<vmem>>) attributes {dimension_semantics = [#tpu.dimension_semantics<parallel>, #tpu.dimension_semantics<parallel>, #tpu.dimension_semantics<arbitrary>], iteration_bounds = array<i64: 1, 1, 1>, scalar_prefetch = 0 : i64, scratch_operands = 1 : i64, tpu.core_type = #tpu.core_type<tc>, window_params = [{transform_indices = @transform_0, window_bounds = array<i64: 16, 128>}, {transform_indices = @transform_1, window_bounds = array<i64: 128, 128>}, {transform_indices = @transform_2, window_bounds = array<i64: 16, 128>}, {transform_indices = @transform_3, window_bounds = array<i64: 16, 128>}]} {
    %c0_i32 = arith.constant 0 : i32
    %0 = arith.cmpi eq, %arg2, %c0_i32 : i32
    %1 = arith.extui %0 : i1 to i32
    %c0_i32_0 = arith.constant 0 : i32
    %2 = arith.cmpi ne, %1, %c0_i32_0 : i32
    scf.if %2 {
      %cst_10 = arith.constant 0.000000e+00 : f32
      %12 = vector.broadcast %cst_10 : f32 to vector<16x128xf32>
      %c0_11 = arith.constant 0 : index
      %c0_12 = arith.constant 0 : index
      %13 = vector.load %arg7[%c0_11, %c0_12] : memref<16x128xf32, #tpu.memory_space<vmem>>, vector<16x128xf32>
      tpu.vector_store %arg7[%c0_11, %c0_12], %12 {strides = array<i32>} : memref<16x128xf32, #tpu.memory_space<vmem>>, vector<16x128xf32>,
    } else {
    }
    %c0 = arith.constant 0 : index
    %c0_1 = arith.constant 0 : index
    %3 = vector.load %arg7[%c0, %c0_1] : memref<16x128xf32, #tpu.memory_space<vmem>>, vector<16x128xf32>
    %c0_2 = arith.constant 0 : index
    %c0_3 = arith.constant 0 : index
    %4 = vector.load %arg3[%c0_2, %c0_3] : memref<16x128xbf16, #tpu.memory_space<vmem>>, vector<16x128xbf16>
    %c0_4 = arith.constant 0 : index
    %c0_5 = arith.constant 0 : index
    %5 = vector.load %arg4[%c0_4, %c0_5] : memref<128x128xbf16, #tpu.memory_space<vmem>>, vector<128x128xbf16>
    %cst = arith.constant dense<0.000000e+00> : vector<16x128xf32>
    %6 = tpu.matmul %4, %5, %cst {dimension_numbers = #tpu.dot_dimension_numbers<[1], [0], [0], [1], [0, 0, 1, 1], [], []>} : vector<16x128xbf16>, vector<128x128xbf16>, vector<16x128xf32> -> vector<16x128xf32>
    %7 = arith.addf %3, %6 : vector<16x128xf32>
    %c0_6 = arith.constant 0 : index
    %c0_7 = arith.constant 0 : index
    %8 = vector.load %arg7[%c0_6, %c0_7] : memref<16x128xf32, #tpu.memory_space<vmem>>, vector<16x128xf32>
    tpu.vector_store %arg7[%c0_6, %c0_7], %7 {strides = array<i32>} : memref<16x128xf32, #tpu.memory_space<vmem>>, vector<16x128xf32>,
    %c0_i32_8 = arith.constant 0 : i32
    %9 = arith.cmpi eq, %arg2, %c0_i32_8 : i32
    %10 = arith.extui %9 : i1 to i32
    %c0_i32_9 = arith.constant 0 : i32
    %11 = arith.cmpi ne, %10, %c0_i32_9 : i32
    scf.if %11 {
      %c0_10 = arith.constant 0 : index
      %c0_11 = arith.constant 0 : index
      %12 = vector.load %arg7[%c0_10, %c0_11] : memref<16x128xf32, #tpu.memory_space<vmem>>, vector<16x128xf32>
      %c0_12 = arith.constant 0 : index
      %c0_13 = arith.constant 0 : index
      %13 = vector.load %arg5[%c0_12, %c0_13] : memref<16x128xf32, #tpu.memory_space<vmem>>, vector<16x128xf32>
      %14 = arith.addf %12, %13 : vector<16x128xf32>
      %c0_14 = arith.constant 0 : index
      %c0_15 = arith.constant 0 : index
      %15 = vector.load %arg6[%c0_14, %c0_15] : memref<16x128xf32, #tpu.memory_space<vmem>>, vector<16x128xf32>
      tpu.vector_store %arg6[%c0_14, %c0_15], %14 {strides = array<i32>} : memref<16x128xf32, #tpu.memory_space<vmem>>, vector<16x128xf32>,
    } else {
    }
    return
  }
  func.func @transform_0(%arg0: i32, %arg1: i32, %arg2: i32) -> (i32, i32) {
    %c0_i32 = arith.constant 0 : i32
    return %arg0, %arg2 : i32, i32
  }
  func.func @transform_1(%arg0: i32, %arg1: i32, %arg2: i32) -> (i32, i32) {
    %c0_i32 = arith.constant 0 : i32
    return %arg2, %arg1 : i32, i32
  }
  func.func @transform_2(%arg0: i32, %arg1: i32, %arg2: i32) -> (i32, i32) {
    %c0_i32 = arith.constant 0 : i32
    return %arg0, %arg1 : i32, i32
  }
  func.func @transform_3(%arg0: i32, %arg1: i32, %arg2: i32) -> (i32, i32) {
    %c0_i32 = arith.constant 0 : i32
    return %arg0, %arg1 : i32, i32
  }
}

module attributes {stable_mosaic.version = 11 : i64} {
  func.func @kernel(%arg0: i32, %arg1: i32, %arg2: i32, %arg3: memref<16x128xbf16, #tpu.memory_space<vmem>>, %arg4: memref<128x128xbf16, #tpu.memory_space<vmem>>, %arg5: memref<16x128xf32, #tpu.memory_space<vmem>>, %arg6: memref<16x128xf32, #tpu.memory_space<vmem>>) attributes {dimension_semantics = [#tpu.dimension_semantics<parallel>, #tpu.dimension_semantics<parallel>, #tpu.dimension_semantics<arbitrary>], iteration_bounds = array<i64: 1, 1, 1>, scalar_prefetch = 0 : i64, scratch_operands = 1 : i64, tpu.core_type = #tpu.core_type<tc>, window_params = [{transform_indices = @transform_0, window_bounds = array<i64: 16, 128>}, {transform_indices = @transform_1, window_bounds = array<i64: 128, 128>}, {transform_indices = @transform_2, window_bounds = array<i64: 16, 128>}]} {
    %c0_i32 = arith.constant 0 : i32
    %0 = arith.cmpi eq, %arg2, %c0_i32 : i32
    %1 = arith.extui %0 : i1 to i32
    %c0_i32_0 = arith.constant 0 : i32
    %2 = arith.cmpi ne, %1, %c0_i32_0 : i32
    scf.if %2 {
      %cst_10 = arith.constant 0.000000e+00 : f32
      %12 = vector.broadcast %cst_10 : f32 to vector<16x128xf32>
      %c0_11 = arith.constant 0 : index
      %c0_12 = arith.constant 0 : index
      %13 = vector.load %arg6[%c0_11, %c0_12] : memref<16x128xf32, #tpu.memory_space<vmem>>, vector<16x128xf32>
      tpu.vector_store %arg6[%c0_11, %c0_12], %12 {strides = array<i32>} : memref<16x128xf32, #tpu.memory_space<vmem>>, vector<16x128xf32>,
    } else {
    }
    %c0 = arith.constant 0 : index
    %c0_1 = arith.constant 0 : index
    %3 = vector.load %arg6[%c0, %c0_1] : memref<16x128xf32, #tpu.memory_space<vmem>>, vector<16x128xf32>
    %c0_2 = arith.constant 0 : index
    %c0_3 = arith.constant 0 : index
    %4 = vector.load %arg3[%c0_2, %c0_3] : memref<16x128xbf16, #tpu.memory_space<vmem>>, vector<16x128xbf16>
    %c0_4 = arith.constant 0 : index
    %c0_5 = arith.constant 0 : index
    %5 = vector.load %arg4[%c0_4, %c0_5] : memref<128x128xbf16, #tpu.memory_space<vmem>>, vector<128x128xbf16>
    %cst = arith.constant dense<0.000000e+00> : vector<16x128xf32>
    %6 = tpu.matmul %4, %5, %cst {dimension_numbers = #tpu.dot_dimension_numbers<[1], [0], [0], [1], [0, 0, 1, 1], [], []>} : vector<16x128xbf16>, vector<128x128xbf16>, vector<16x128xf32> -> vector<16x128xf32>
    %7 = arith.addf %3, %6 : vector<16x128xf32>
    %c0_6 = arith.constant 0 : index
    %c0_7 = arith.constant 0 : index
    %8 = vector.load %arg6[%c0_6, %c0_7] : memref<16x128xf32, #tpu.memory_space<vmem>>, vector<16x128xf32>
    tpu.vector_store %arg6[%c0_6, %c0_7], %7 {strides = array<i32>} : memref<16x128xf32, #tpu.memory_space<vmem>>, vector<16x128xf32>,
    %c0_i32_8 = arith.constant 0 : i32
    %9 = arith.cmpi eq, %arg2, %c0_i32_8 : i32
    %10 = arith.extui %9 : i1 to i32
    %c0_i32_9 = arith.constant 0 : i32
    %11 = arith.cmpi ne, %10, %c0_i32_9 : i32
    scf.if %11 {
      %c0_10 = arith.constant 0 : index
      %c0_11 = arith.constant 0 : index
      %12 = vector.load %arg6[%c0_10, %c0_11] : memref<16x128xf32, #tpu.memory_space<vmem>>, vector<16x128xf32>
      %c0_12 = arith.constant 0 : index
      %c0_13 = arith.constant 0 : index
      %13 = vector.load %arg5[%c0_12, %c0_13] : memref<16x128xf32, #tpu.memory_space<vmem>>, vector<16x128xf32>
      tpu.vector_store %arg5[%c0_12, %c0_13], %12 {strides = array<i32>} : memref<16x128xf32, #tpu.memory_space<vmem>>, vector<16x128xf32>,
    } else {
    }
    return
  }
  func.func @transform_0(%arg0: i32, %arg1: i32, %arg2: i32) -> (i32, i32) {
    %c0_i32 = arith.constant 0 : i32
    return %arg0, %arg2 : i32, i32
  }
  func.func @transform_1(%arg0: i32, %arg1: i32, %arg2: i32) -> (i32, i32) {
    %c0_i32 = arith.constant 0 : i32
    return %arg2, %arg1 : i32, i32
  }
  func.func @transform_2(%arg0: i32, %arg1: i32, %arg2: i32) -> (i32, i32) {
    %c0_i32 = arith.constant 0 : i32
    return %arg0, %arg1 : i32, i32
  }
}

</mosaic_0001>

<bundles_post_ra>
// kernel: transformer_lm_forward.16
= control target key start
LH: loop header
LB: loop body
LE: loop exit
PB: predicated region body
PF: predicated region fallthrough
CT: control target
= control target key end

     0   :  { %s91_s0 = inlined_call_operand.vmem [shape: f32[16,128], index: 0, kind: input, shape index: {}]   ;;  %s92_s1 = inlined_call_operand.vmem [shape: f32[1,128], index: 1, kind: input, shape index: {}]   ;;  %s93_s2 = inlined_call_operand.vmem [shape: bf16[16,128], index: 2, kind: output, shape index: {}]  }
   0x1   :  { %v11_v0 = vld [vmem:[%s91_s0] sm:$0xff]  ;;  %v12_v1 = vld [vmem:[%s91_s0 + $0x8] sm:$0xff] }
   0x2   :  { %v13_v2 = vmul.f32 %v11_v0, %v11_v0  ;;  %v14_v3 = vmul.f32 %v12_v1, %v12_v1  ;;  %v50_v13 = vld [vmem:[%s92_s1] ss:$0 sm:$0xff] }
   0x4   :  { %15 = vadd.xlane.f32.xlu0 %v13_v2 }
   0x8   :  { %17 = vadd.xlane.f32.xlu0 %v14_v3 }
  0x8d   :  { %v16_v4 = vpop.xlane.xlu0 %15 }
  0x8e   :  { %v19_v5 = vmul.f32 0.03125, %v16_v4 }
  0x90   :  { %v21_v6 = vadd.f32 1e-05, %v19_v5 }
  0x91   :  { %v18_v7 = vpop.xlane.xlu0 %17 }
  0x92   :  { %60 = vrsqrt.f32 %v21_v6  ;;  %v20_v8 = vmul.f32 0.03125, %v18_v7 }
  0x94   :  { %v22_v9 = vadd.f32 1e-05, %v20_v8 }
  0x96   :  { %62 = vrsqrt.f32 %v22_v9 }
  0x9f   :  { %v61_v10 = vpop.eup %60 }
  0xa0   :  { %v25_v11 = vmul.f32 %v61_v10, %v11_v0 }
  0xa2   :  { %v34_v15 = vmul.f32 %v50_v13, %v25_v11 }
  0xa3   :  { %v63_v12 = vpop.eup %62 }
  0xa4   :  { %v26_v14 = vmul.f32 %v63_v12, %v12_v1 }
  0xa6   :  { %v35_v16 = vmul.f32 %v50_v13, %v26_v14 }
  0xa8   :  { %v58_v17 = vpack.c.bf16 %v35_v16, %v34_v15 }
  0xaa   :  { %59 = vst [vmem:[%s93_s2] sm:$0xff] %v58_v17  }

// kernel: transformer_lm_forward.17
= control target key start
LH: loop header
LB: loop body
LE: loop exit
PB: predicated region body
PF: predicated region fallthrough
CT: control target
= control target key end

     0   :  { %v214_v0 = vmov 0.0   ;;  %vm215_vm0 = vmmov 0   ;;  %s261_s1 = inlined_call_operand.vmem [shape: bf16[128,128], index: 1, kind: input, shape index: {}]   ;;  %s262_s0 = inlined_call_operand.vmem [shape: bf16[16,128], index: 0, kind: input, shape index: {}]   ;;  %s263_s2 = inlined_call_operand.vmem [shape: bf16[16,128], index: 2, kind: output, shape index: {}]  }
   0x1   :  { %183 = vmatprep.subr.bf16.mxu0 %v214_v0  ;;  %v205_v1 = vld [vmem:[%s261_s1 + $0x38] sm:$0xff]   ;;  %199 = vmatprep.mubr.msk.bf16.mxu0 %vm215_vm0, %v214_v0  ;;  %v206_v2 = vld [vmem:[%s261_s1 + $0x30] sm:$0xff]   ;;  %v207_v3 = vld [vmem:[%s261_s1 + $0x28] sm:$0xff]  }
   0x2   :  { %184 = vmatpush3.bf16.msra.mxu0 %v205_v1  ;;  %v208_v4 = vld [vmem:[%s261_s1 + $0x20] sm:$0xff]   ;;  %v209_v5 = vld [vmem:[%s261_s1 + $0x18] sm:$0xff]   ;;  %v210_v6 = vld [vmem:[%s261_s1 + $0x10] sm:$0xff]  }
   0x3   :  { %185 = vmatprep.subr.bf16.mxu0 %v214_v0  ;;  %v211_v7 = vld [vmem:[%s261_s1 + $0x8] sm:$0xff]   ;;  %v212_v8 = vld [vmem:[%s261_s1] sm:$0xff]  }
   0x4   :  { %v213_v9 = vld [vmem:[%s262_s0] sm:$0xff]  }
   0x6   :  { %186 = vmatpush3.bf16.msra.mxu0 %v206_v2 }
   0x7   :  { %187 = vmatprep.subr.bf16.mxu0 %v214_v0 }
   0xa   :  { %188 = vmatpush3.bf16.msra.mxu0 %v207_v3 }
   0xb   :  { %189 = vmatprep.subr.bf16.mxu0 %v214_v0 }
   0xe   :  { %190 = vmatpush3.bf16.msra.mxu0 %v208_v4 }
   0xf   :  { %191 = vmatprep.subr.bf16.mxu0 %v214_v0 }
  0x12   :  { %192 = vmatpush3.bf16.msra.mxu0 %v209_v5 }
  0x13   :  { %193 = vmatprep.subr.bf16.mxu0 %v214_v0 }
  0x16   :  { %194 = vmatpush3.bf16.msra.mxu0 %v210_v6 }
  0x17   :  { %195 = vmatprep.subr.bf16.mxu0 %v214_v0 }
  0x1a   :  { %196 = vmatpush3.bf16.msra.mxu0 %v211_v7 }
  0x1b   :  { %197 = vmatprep.subr.bf16.mxu0 %v214_v0 }
  0x1e   :  { %198 = vmatpush3.bf16.msra.mxu0 %v212_v8 }
  0x21   :  { %200 = vmatmul.mubr.bf16.vlgmr.msra.gmra.mxu0 %v213_v9 }
  0xe1   :  { %v126_v10 = vpop.f32.mrf.mxu0 }
  0xe3   :  { %v201_v11 = vpop.f32.mrf.mxu0 }
  0xe5   :  { %v129_v12 = vpop.f32.mrf.mxu0 }
  0xe6   :  { %v172_v13 = vpack.c.bf16 %v129_v12, %v126_v10 }
  0xe7   :  { %v202_v14 = vpop.f32.mrf.mxu0 }
  0xe8   :  { %173 = vst [vmem:[%s263_s2] sm:$0xff] %v172_v13  }

// kernel: transformer_lm_forward.18
= control target key start
LH: loop header
LB: loop body
LE: loop exit
PB: predicated region body
PF: predicated region fallthrough
CT: control target
= control target key end

     0   :  { %s795_s12 = smov 0   ;;  %s797_s13 = smov 0   ;;  %s851_s0 = inlined_call_operand.vmem [shape: bf16[8,8,8], index: 0, kind: input, shape index: {}]   ;;  %s852_s1 = inlined_call_operand.vmem [shape: bf16[8,8,8], index: 1, kind: input, shape index: {}]   ;;  %s853_s2 = inlined_call_operand.vmem [shape: bf16[8,8,8], index: 2, kind: input, shape index: {}]   ;;  %s854_s3 = inlined_call_operand.vmem [shape: bf16[8,8,8], index: 3, kind: output, shape index: {}]  }
   0x1   :  { %s799_s14 = smov 0  }
   0x2 LB: > { %s32_s15 = sadd.s32 1, %s765_s13  ;;  %p684_p0 = scmp.ge.s32.totalorder %s769_s14, 1  ;;  %s769_s14 = sphi %s799_s14, %s13_s14   ;;  %s765_s13 = sphi %s797_s13, %s856_s13   ;;  %s761_s12 = sphi %s795_s12, %s855_s12  }
   0x3   : > { %p34_p1 = scmp.ge.s32.totalorder %s32_s15, 8  ;;  %p190_p2 = scmp.lt.s32.totalorder %s769_s14, 9 }
   0x5   : > { %s858_s15 = smov (%p34_p1, %s32_s15), 0  ;;  %p191_p3 = pnand %p684_p0, %p190_p2 }
   0x6   : > { %p232_p4 = scmp.lt.s32.totalorder (!%p191_p3), %s761_s12, 7 }
   0x7   : > { %194 = sbr.rel (%p191_p3) target bundleno = 793 (0x319), region = 32 }
   0xc   : > { %vm268_vm0 = vcmask 64512   ;;  %v771_v0 = vmov 0.0   ;;  %vm772_vm1 = vmmov 0   ;;  %s860_s12 = smov (!%p232_p4, %s761_s12), 7  ;;  %vm265_vm2 = vcmask 7168  }
   0xd   : > { %699 = vmatprep.subr.bf16.mxu0 %v771_v0  ;;  %269 = vst.msk [vmem:[#allocation4] sm:$0xff] %vm268_vm0, %v771_v0  ;;  %701 = vmatprep.mubr.msk.bf16.mxu0 %vm772_vm1, %v771_v0  ;;  %s814_s16 = sshll.u32 %s860_s12, 2  ;;  %v773_v4 = vmov -inf   ;;  %v465_v5 = vlaneseq  ;;  %v774_v14 = vmov 0   ;;  %vm511_vm4 = vcmask 1043456  }
   0xe   : > { %705 = vmatprep.subr.bf16.mxu1 %v771_v0  ;;  %707 = vmatprep.mubr.msk.bf16.mxu1 %vm772_vm1, %v771_v0  ;;  %s245_s19 = scalar_lea.vmem %s852_s1, %s814_s16  ;;  %s238_s22 = scalar_lea.vmem %s851_s0, %s814_s16  ;;  %266 = vst.msk [vmem:[#allocation2] sm:$0xff] %vm265_vm2, %v773_v4  ;;  %267 = vst.msk [vmem:[#allocation3] sm:$0xff] %vm265_vm2, %v771_v0  ;;  %vm571_vm5 = vcmask 60416  }
   0xf   : > { %v417_v1 = vld [vmem:[%s245_s19] sm:$0xf]  ;;  %v466_v6 = vshrl.u32 %v465_v5, 7  ;;  %v470_v7 = vand.u32 127, %v465_v5  ;;  %739 = vset.pattern.permute.xlu0 %v774_v14  ;;  %740 = vset.pattern.permute.xlu1 %v774_v14  ;;  %s252_s25 = scalar_lea.vmem %s853_s2, %s814_s16  ;;  %s259_s28 = scalar_lea.vmem %s854_s3, %s814_s16 }
  0x10   : > { %v423_v2 = vsel %vm268_vm0, %v417_v1, 0  ;;  %v416_v3 = vld [vmem:[%s238_s22] sm:$0xf] }
  0x11   : > { %700 = vmatpush3.bf16.xpose.msra.mxu0 %v423_v2  ;;  %vm473_vm3 = vcmp.gt.s32.totalorder %v470_v7, %v466_v6  ;;  %v507_v19 = vld [vmem:[%s252_s25] sm:$0xf] }
  0x12   : > { %v513_v20 = vsel %vm511_vm4, %v507_v19, 0 }
  0x13   : > { %706 = vmatpush3.bf16.msra.mxu1 %v513_v20 }
  0x14   : > { %v499_v35 = vld [vmem:[#allocation4] sm:$0xff] }
  0x15   : > { %v475_v15 = vld [vmem:[#allocation2] sm:$0xff]  ;;  %v491_v29 = vld [vmem:[#allocation3] sm:$0xff] }
  0x18   : > { %702 = vmatmul.mubr.msk.bf16.vlgmr.msra.gmra.mxu0 %vm268_vm0, %v416_v3 }
  0xd8   : > { %v459_v8 = vpop.f32.mrf.mxu0 }
  0xd9   : > { %v474_v9 = vsel %vm473_vm3, -1e+30, %v459_v8 }
  0xda   : > { %v703_v10 = vpop.f32.mrf.mxu0  ;;  %v476_v11 = vsel %vm268_vm0, %v474_v9, -inf }
  0xdb   : > { %477 = vmax.xlane.f32.xlu0 %v476_v11 }
  0xdc   : > { %v462_v12 = vpop.f32.mrf.mxu0 }
  0xde   : > { %v704_v13 = vpop.f32.mrf.mxu0 }
 0x164   : > { %v478_v16 = vpop.xlane.xlu0 %477 }
 0x165   : > { %v479_v17 = vmax.f32 %v475_v15, %v478_v16 }
 0x167   : > { %v480_v18 = vsub.f32 %v475_v15, %v479_v17  ;;  %557 = vst.msk [vmem:[#allocation2] sm:$0xff] %vm265_vm2, %v479_v17  ;;  %485 = vperm.xlu0 %739, %v479_v17  }
 0x169   : > { %v481_v25 = vmul.f32 1.442695, %v480_v18 }
 0x1e2   : > { %v486_v21 = vpop.permute.xlu0 %485 }
 0x1e3   : > { %v488_v22 = vsub.f32 %v474_v9, %v486_v21 }
 0x1e5   : > { %v489_v23 = vmul.f32 1.442695, %v488_v22 }
 0x1e7   : > { %741 = vpow2.f32 %v489_v23 }
 0x1e8   : > { %743 = vpow2.f32 %v481_v25 }
 0x1f4   : > { %v742_v24 = vpop.eup %741 }
 0x1f5   : > { %v493_v26 = vsel %vm268_vm0, %v742_v24, 0.0  ;;  %v506_v27 = vpack.c.bf16 %v742_v24, %v742_v24  ;;  %v744_v28 = vpop.eup %743 }
 0x1f6   : > { %494 = vadd.xlane.f32.xlu1 %v493_v26  ;;  %v492_v30 = vmul.f32 %v744_v28, %v491_v29 }
 0x1f7   : > { %708 = vmatmul.mubr.msk.bf16.vlgmr.msra.gmra.mxu1 %vm268_vm0, %v506_v27 }
 0x207   : > { %502 = vperm.xlu1 %740, %v744_v28  }
 0x27f   : > { %v495_v31 = vpop.xlane.xlu1 %494 }
 0x280   : > { %v496_v32 = vadd.f32 %v495_v31, %v492_v30 }
 0x282   : > { %498 = vst.msk [vmem:[#allocation3] sm:$0xff] %vm265_vm2, %v496_v32 }
 0x283   : > { %v503_v36 = vpop.permute.xlu1 %502 }
 0x284   : > { %v505_v37 = vmul.f32 %v503_v36, %v499_v35 }
 0x289   : > { %v562_v33 = vld [vmem:[#allocation3] sm:$0xff] }
 0x28a   : > { %745 = vrcp.f32 %v562_v33 }
 0x297   : > { %v746_v34 = vpop.eup %745 }
 0x298   : > { %566 = vperm.xlu1 %740, %v746_v34  }
 0x2b7   : > { %v549_v38 = vpop.f32.mrf.mxu1 }
 0x2b8   : > { %v555_v39 = vadd.f32 %v549_v38, %v505_v37 }
 0x2b9   : > { %v709_v40 = vpop.f32.mrf.mxu1 }
 0x2ba   : > { %556 = vst.msk [vmem:[#allocation4] sm:$0xff] %vm268_vm0, %v555_v39 }
 0x2bb   : > { %v552_v41 = vpop.f32.mrf.mxu1 }
 0x2bd   : > { %v710_v42 = vpop.f32.mrf.mxu1 }
 0x2c1   : > { %v561_v43 = vld [vmem:[#allocation4] sm:$0xff] }
 0x313   : > { %v567_v44 = vpop.permute.xlu1 %566 }
 0x314   : > { %v569_v45 = vmul.f32 %v567_v44, %v561_v43 }
 0x316   : > { %v570_v46 = vpack.c.bf16 %v569_v45, %v569_v45 }
 0x318   : > { %572 = vst.msk [vmem:[%s259_s28] sm:$0xf] %vm571_vm5, %v570_v46 }
 0x319 PF: > { %s13_s14 = sadd.s32 1, %s769_s14   ;;  %s855_s12 = smov %s765_s13 }
 0x31a   : > { %p10_p5 = scmp.ge.s32.totalorder %s13_s14, 10   ;;  %s856_s13 = smov %s858_s15 }
 0x31c   :  { %12 = sbr.rel (!%p10_p5) target bundleno = 2 (0x2), region = 84 }

// kernel: transformer_lm_forward.21
= control target key start
LH: loop header
LB: loop body
LE: loop exit
PB: predicated region body
PF: predicated region fallthrough
CT: control target
= control target key end

     0   :  { %v228_v0 = vmov 0.0   ;;  %vm229_vm0 = vmmov 0   ;;  %s275_s1 = inlined_call_operand.vmem [shape: bf16[128,128], index: 1, kind: input, shape index: {}]   ;;  %s276_s0 = inlined_call_operand.vmem [shape: bf16[16,128], index: 0, kind: input, shape index: {}]   ;;  %s277_s2 = inlined_call_operand.vmem [shape: bf16[16,128], index: 2, kind: output, shape index: {}]  }
   0x1   :  { %193 = vmatprep.subr.bf16.mxu0 %v228_v0  ;;  %v215_v1 = vld [vmem:[%s275_s1 + $0x38] sm:$0xff]   ;;  %209 = vmatprep.mubr.msk.bf16.mxu0 %vm229_vm0, %v228_v0  ;;  %v216_v2 = vld [vmem:[%s275_s1 + $0x30] sm:$0xff]   ;;  %v217_v3 = vld [vmem:[%s275_s1 + $0x28] sm:$0xff]  }
   0x2   :  { %194 = vmatpush3.bf16.msra.mxu0 %v215_v1  ;;  %v218_v4 = vld [vmem:[%s275_s1 + $0x20] sm:$0xff]   ;;  %v219_v5 = vld [vmem:[%s275_s1 + $0x18] sm:$0xff]   ;;  %v220_v6 = vld [vmem:[%s275_s1 + $0x10] sm:$0xff]  }
   0x3   :  { %195 = vmatprep.subr.bf16.mxu0 %v228_v0  ;;  %v221_v7 = vld [vmem:[%s275_s1 + $0x8] sm:$0xff]   ;;  %v222_v8 = vld [vmem:[%s275_s1] sm:$0xff]  }
   0x4   :  { %v223_v9 = vld [vmem:[%s276_s0] sm:$0xff]  }
   0x6   :  { %196 = vmatpush3.bf16.msra.mxu0 %v216_v2 }
   0x7   :  { %197 = vmatprep.subr.bf16.mxu0 %v228_v0 }
   0xa   :  { %198 = vmatpush3.bf16.msra.mxu0 %v217_v3 }
   0xb   :  { %199 = vmatprep.subr.bf16.mxu0 %v228_v0 }
   0xe   :  { %200 = vmatpush3.bf16.msra.mxu0 %v218_v4 }
   0xf   :  { %201 = vmatprep.subr.bf16.mxu0 %v228_v0 }
  0x12   :  { %202 = vmatpush3.bf16.msra.mxu0 %v219_v5 }
  0x13   :  { %203 = vmatprep.subr.bf16.mxu0 %v228_v0 }
  0x16   :  { %204 = vmatpush3.bf16.msra.mxu0 %v220_v6 }
  0x17   :  { %205 = vmatprep.subr.bf16.mxu0 %v228_v0 }
  0x1a   :  { %206 = vmatpush3.bf16.msra.mxu0 %v221_v7 }
  0x1b   :  { %207 = vmatprep.subr.bf16.mxu0 %v228_v0 }
  0x1e   :  { %208 = vmatpush3.bf16.msra.mxu0 %v222_v8 }
  0x21   :  { %210 = vmatmul.mubr.bf16.vlgmr.msra.gmra.mxu0 %v223_v9 }
  0xe1   :  { %v126_v10 = vpop.f32.mrf.mxu0 }
  0xe2   :  { %v144_v11 = vmul.f32 0.70710677, %v126_v10  ;;  %v142_v19 = vmul.f32 0.5, %v126_v10 }
  0xe3   :  { %v211_v12 = vpop.f32.mrf.mxu0 }
  0xe4   :  { %224 = verf.f32 %v144_v11 }
  0xe5   :  { %v129_v13 = vpop.f32.mrf.mxu0 }
  0xe6   :  { %v145_v14 = vmul.f32 0.70710677, %v129_v13  ;;  %v143_v20 = vmul.f32 0.5, %v129_v13 }
  0xe7   :  { %v212_v15 = vpop.f32.mrf.mxu0 }
  0xe8   :  { %226 = verf.f32 %v145_v14 }
  0xf1   :  { %v225_v16 = vpop.eup %224 }
  0xf2   :  { %v148_v17 = vadd.f32 1.0, %v225_v16 }
  0xf4   :  { %v150_v22 = vmul.f32 %v148_v17, %v142_v19 }
  0xf5   :  { %v227_v18 = vpop.eup %226 }
  0xf6   :  { %v149_v21 = vadd.f32 1.0, %v227_v18 }
  0xf8   :  { %v151_v23 = vmul.f32 %v149_v21, %v143_v20 }
  0xfa   :  { %v182_v24 = vpack.c.bf16 %v151_v23, %v150_v22 }
  0xfc   :  { %183 = vst [vmem:[%s277_s2] sm:$0xff] %v182_v24  }

// kernel: transformer_lm_forward.19
= control target key start
LH: loop header
LB: loop body
LE: loop exit
PB: predicated region body
PF: predicated region fallthrough
CT: control target
= control target key end

     0   :  { %v204_v0 = vmov 0.0   ;;  %vm205_vm0 = vmmov 0   ;;  %s265_s1 = inlined_call_operand.vmem [shape: bf16[128,128], index: 1, kind: input, shape index: {}]   ;;  %s266_s0 = inlined_call_operand.vmem [shape: bf16[16,128], index: 0, kind: input, shape index: {}]   ;;  %s267_s2 = inlined_call_operand.vmem [shape: f32[16,128], index: 2, kind: input, shape index: {}]   ;;  %s268_s3 = inlined_call_operand.vmem [shape: f32[16,128], index: 3, kind: output, shape index: {}]  }
   0x1   :  { %173 = vmatprep.subr.bf16.mxu0 %v204_v0  ;;  %v195_v1 = vld [vmem:[%s265_s1 + $0x38] sm:$0xff]   ;;  %189 = vmatprep.mubr.msk.bf16.mxu0 %vm205_vm0, %v204_v0  ;;  %v196_v2 = vld [vmem:[%s265_s1 + $0x30] sm:$0xff]   ;;  %v197_v3 = vld [vmem:[%s265_s1 + $0x28] sm:$0xff]  }
   0x2   :  { %174 = vmatpush3.bf16.msra.mxu0 %v195_v1  ;;  %v198_v4 = vld [vmem:[%s265_s1 + $0x20] sm:$0xff]   ;;  %v199_v5 = vld [vmem:[%s265_s1 + $0x18] sm:$0xff]   ;;  %v200_v6 = vld [vmem:[%s265_s1 + $0x10] sm:$0xff]  }
   0x3   :  { %175 = vmatprep.subr.bf16.mxu0 %v204_v0  ;;  %v201_v7 = vld [vmem:[%s265_s1 + $0x8] sm:$0xff]   ;;  %v202_v8 = vld [vmem:[%s265_s1] sm:$0xff]  }
   0x4   :  { %v203_v9 = vld [vmem:[%s266_s0] sm:$0xff]   ;;  %v146_v14 = vld [vmem:[%s267_s2 + $0x8] sm:$0xff] }
   0x5   :  { %v145_v10 = vld [vmem:[%s267_s2] sm:$0xff] }
   0x6   :  { %176 = vmatpush3.bf16.msra.mxu0 %v196_v2 }
   0x7   :  { %177 = vmatprep.subr.bf16.mxu0 %v204_v0 }
   0xa   :  { %178 = vmatpush3.bf16.msra.mxu0 %v197_v3 }
   0xb   :  { %179 = vmatprep.subr.bf16.mxu0 %v204_v0 }
   0xe   :  { %180 = vmatpush3.bf16.msra.mxu0 %v198_v4 }
   0xf   :  { %181 = vmatprep.subr.bf16.mxu0 %v204_v0 }
  0x12   :  { %182 = vmatpush3.bf16.msra.mxu0 %v199_v5 }
  0x13   :  { %183 = vmatprep.subr.bf16.mxu0 %v204_v0 }
  0x16   :  { %184 = vmatpush3.bf16.msra.mxu0 %v200_v6 }
  0x17   :  { %185 = vmatprep.subr.bf16.mxu0 %v204_v0 }
  0x1a   :  { %186 = vmatpush3.bf16.msra.mxu0 %v201_v7 }
  0x1b   :  { %187 = vmatprep.subr.bf16.mxu0 %v204_v0 }
  0x1e   :  { %188 = vmatpush3.bf16.msra.mxu0 %v202_v8 }
  0x21   :  { %190 = vmatmul.mubr.bf16.vlgmr.msra.gmra.mxu0 %v203_v9 }
  0xe1   :  { %v129_v11 = vpop.f32.mrf.mxu0 }
  0xe2   :  { %v147_v12 = vadd.f32 %v145_v10, %v129_v11 }
  0xe3   :  { %v191_v13 = vpop.f32.mrf.mxu0 }
  0xe4   :  { %149 = vst [vmem:[%s268_s3] sm:$0xff] %v147_v12 }
  0xe5   :  { %v132_v15 = vpop.f32.mrf.mxu0 }
  0xe6   :  { %v148_v16 = vadd.f32 %v146_v14, %v132_v15 }
  0xe7   :  { %v192_v17 = vpop.f32.mrf.mxu0 }
  0xe8   :  { %150 = vst [vmem:[%s268_s3 + $0x8] sm:$0xff] %v148_v16 }

// kernel: transformer_lm_forward.31
= control target key start
LH: loop header
LB: loop body
LE: loop exit
PB: predicated region body
PF: predicated region fallthrough
CT: control target
= control target key end

     0   :  { %v197_v0 = vmov 0.0   ;;  %vm198_vm0 = vmmov 0   ;;  %s247_s1 = inlined_call_operand.vmem [shape: bf16[128,128], index: 1, kind: input, shape index: {}]   ;;  %s248_s0 = inlined_call_operand.vmem [shape: bf16[16,128], index: 0, kind: input, shape index: {}]   ;;  %s249_s2 = inlined_call_operand.vmem [shape: f32[16,128], index: 2, kind: output, shape index: {}]  }
   0x1   :  { %166 = vmatprep.subr.bf16.mxu0 %v197_v0  ;;  %v188_v1 = vld [vmem:[%s247_s1 + $0x38] sm:$0xff]   ;;  %182 = vmatprep.mubr.msk.bf16.mxu0 %vm198_vm0, %v197_v0  ;;  %v189_v2 = vld [vmem:[%s247_s1 + $0x30] sm:$0xff]   ;;  %v190_v3 = vld [vmem:[%s247_s1 + $0x28] sm:$0xff]  }
   0x2   :  { %167 = vmatpush3.bf16.msra.mxu0 %v188_v1  ;;  %v191_v4 = vld [vmem:[%s247_s1 + $0x20] sm:$0xff]   ;;  %v192_v5 = vld [vmem:[%s247_s1 + $0x18] sm:$0xff]   ;;  %v193_v6 = vld [vmem:[%s247_s1 + $0x10] sm:$0xff]  }
   0x3   :  { %168 = vmatprep.subr.bf16.mxu0 %v197_v0  ;;  %v194_v7 = vld [vmem:[%s247_s1 + $0x8] sm:$0xff]   ;;  %v195_v8 = vld [vmem:[%s247_s1] sm:$0xff]  }
   0x4   :  { %v196_v9 = vld [vmem:[%s248_s0] sm:$0xff]  }
   0x6   :  { %169 = vmatpush3.bf16.msra.mxu0 %v189_v2 }
   0x7   :  { %170 = vmatprep.subr.bf16.mxu0 %v197_v0 }
   0xa   :  { %171 = vmatpush3.bf16.msra.mxu0 %v190_v3 }
   0xb   :  { %172 = vmatprep.subr.bf16.mxu0 %v197_v0 }
   0xe   :  { %173 = vmatpush3.bf16.msra.mxu0 %v191_v4 }
   0xf   :  { %174 = vmatprep.subr.bf16.mxu0 %v197_v0 }
  0x12   :  { %175 = vmatpush3.bf16.msra.mxu0 %v192_v5 }
  0x13   :  { %176 = vmatprep.subr.bf16.mxu0 %v197_v0 }
  0x16   :  { %177 = vmatpush3.bf16.msra.mxu0 %v193_v6 }
  0x17   :  { %178 = vmatprep.subr.bf16.mxu0 %v197_v0 }
  0x1a   :  { %179 = vmatpush3.bf16.msra.mxu0 %v194_v7 }
  0x1b   :  { %180 = vmatprep.subr.bf16.mxu0 %v197_v0 }
  0x1e   :  { %181 = vmatpush3.bf16.msra.mxu0 %v195_v8 }
  0x21   :  { %183 = vmatmul.mubr.bf16.vlgmr.msra.gmra.mxu0 %v196_v9 }
  0xe1   :  { %v126_v10 = vpop.f32.mrf.mxu0 }
  0xe2   :  { %142 = vst [vmem:[%s249_s2] sm:$0xff] %v126_v10 }
  0xe3   :  { %v184_v11 = vpop.f32.mrf.mxu0 }
  0xe5   :  { %v129_v12 = vpop.f32.mrf.mxu0 }
  0xe6   :  { %143 = vst [vmem:[%s249_s2 + $0x8] sm:$0xff] %v129_v12 }
  0xe7   :  { %v185_v13 = vpop.f32.mrf.mxu0 }

</bundles_post_ra>
